<compile_context>
chip_gen: v5e
topology: v5e:2x2
jax: 0.10.0
libtpu: 0.0.40
codegen_flags: <defaults>
</compile_context>

<pallas_src>
import functools

import jax
import jax.numpy as jnp
from jax.experimental import pallas as pl
from jax.experimental.pallas import tpu as pltpu

IN_SIZE = 23
IN_PAD = 128                 # zero-padded, lane-aligned input feature dim
HIDDEN = [128, 128, 256]
MAX_F = max(HIDDEN)
BN_EPS = 1e-5
ROW_ALIGN = 16               # bf16 activations: 16 sublanes per vreg


# ---------------------------------------------------------------------------
# VMEM budget (generation-aware)
# ---------------------------------------------------------------------------
def _vmem_limit_bytes():
    try:
        cap = int(pltpu.get_tpu_info().vmem_capacity_bytes)
    except Exception:
        cap = 64 * 1024 * 1024
    # leave ~1/4 headroom for compiler scratch / double-buffer bookkeeping
    return max(32 * 1024 * 1024, cap - cap // 4)


# ---------------------------------------------------------------------------
# Single-block fused kernel (small / moderate N: everything resident in VMEM)
# ---------------------------------------------------------------------------
def _fused_kernel(x_ref, w1_ref, w2_ref, w3_ref, gb_ref, o_ref, *, n_true):
    n_pad = x_ref.shape[0]
    inv_n = 1.0 / float(n_true)
    needs_mask = n_pad != n_true
    if needs_mask:
        valid = jax.lax.broadcasted_iota(jnp.int32, (n_pad, 1), 0) < n_true

    def block(h_bf16, w_ref, g, beta):
        # Bias-free Linear (bias cancels under training-mode BN); bf16 MXU, f32 acc.
        y = jnp.dot(h_bf16, w_ref[...], preferred_element_type=jnp.float32)
        # One-pass batch statistics (biased variance, training-mode BN), f32.
        s1 = jnp.sum(y, axis=0, keepdims=True)
        s2 = jnp.sum(y * y, axis=0, keepdims=True)
        mean = s1 * inv_n
        var = jnp.maximum(s2 * inv_n - mean * mean, 0.0)
        scale = g * jax.lax.rsqrt(var + BN_EPS)
        shift = beta - mean * scale
        z = jnp.maximum(y * scale + shift, 0.0)
        if needs_mask:
            # keep padded rows at zero so they never contaminate later-layer stats
            z = jnp.where(valid, z, 0.0)
        return z.astype(jnp.bfloat16)          # carry activations in bf16

    h = block(x_ref[...], w1_ref, gb_ref[0:1, 0:HIDDEN[0]], gb_ref[1:2, 0:HIDDEN[0]])
    h = block(h, w2_ref, gb_ref[2:3, 0:HIDDEN[1]], gb_ref[3:4, 0:HIDDEN[1]])
    h = block(h, w3_ref, gb_ref[4:5, 0:HIDDEN[2]], gb_ref[5:6, 0:HIDDEN[2]])
    o_ref[...] = h.astype(o_ref.dtype)


def _mlp_encoder_fused(x_pad, ws, gb, n_true, out_dtype, vmem_limit):
    n_pad = x_pad.shape[0]
    out_f = HIDDEN[-1]

    def full_spec(shape):
        return pl.BlockSpec(shape, lambda: (0,) * len(shape))

    kernel = functools.partial(_fused_kernel, n_true=n_true)
    out = pl.pallas_call(
        kernel,
        out_shape=jax.ShapeDtypeStruct((n_pad, out_f), out_dtype),
        in_specs=([full_spec(x_pad.shape)]
                  + [full_spec(w.shape) for w in ws]
                  + [full_spec(gb.shape)]),
        out_specs=full_spec((n_pad, out_f)),
        compiler_params=pltpu.CompilerParams(vmem_limit_bytes=vmem_limit),
    )(x_pad, *ws, gb)
    return out[:n_true]


# ---------------------------------------------------------------------------
# Gridded two-pass path (large N): per layer, stats pass + apply pass
# ---------------------------------------------------------------------------
def _stats_kernel(h_ref, w_ref, s_ref):
    # Accumulate s1 / s2 over the whole batch into a resident [2, out_f] block.
    @pl.when(pl.program_id(0) == 0)
    def _():
        s_ref[...] = jnp.zeros_like(s_ref)

    y = jnp.dot(h_ref[...], w_ref[...], preferred_element_type=jnp.float32)
    upd = jnp.concatenate(
        [jnp.sum(y, axis=0, keepdims=True),
         jnp.sum(y * y, axis=0, keepdims=True)], axis=0)
    s_ref[...] += upd


def _apply_kernel(h_ref, w_ref, ss_ref, o_ref, *, n_true, chunk, mask_rows):
    y = jnp.dot(h_ref[...], w_ref[...], preferred_element_type=jnp.float32)
    z = jnp.maximum(y * ss_ref[0:1, :] + ss_ref[1:2, :], 0.0)
    if mask_rows:
        row = pl.program_id(0) * chunk + jax.lax.broadcasted_iota(
            jnp.int32, (chunk, 1), 0)
        z = jnp.where(row < n_true, z, 0.0)
    o_ref[...] = z.astype(o_ref.dtype)


def _fold_bn(stats, g, beta, n_true):
    """stats: [2, out_f] (sum, sum-of-squares) -> [2, out_f] (scale, shift), f32."""
    mean = stats[0] / float(n_true)
    var = jnp.maximum(stats[1] / float(n_true) - mean * mean, 0.0)
    scale = g * jax.lax.rsqrt(var + BN_EPS)
    shift = beta - mean * scale
    return jnp.stack([scale, shift], axis=0)


def _mlp_encoder_gridded(x_pad, ws, gb, n_true, out_dtype, chunk, vmem_limit):
    n_pad = x_pad.shape[0]
    num_chunks = n_pad // chunk
    mask_rows = n_pad != n_true
    h = x_pad
    for li, w in enumerate(ws):
        in_f, out_f = w.shape
        g = gb[2 * li, :out_f]
        beta = gb[2 * li + 1, :out_f]

        # Pass 1: batch statistics, accumulator output under an "arbitrary" axis.
        stats = pl.pallas_call(
            _stats_kernel,
            out_shape=jax.ShapeDtypeStruct((2, out_f), jnp.float32),
            grid=(num_chunks,),
            in_specs=[pl.BlockSpec((chunk, in_f), lambda i: (i, 0)),
                      pl.BlockSpec((in_f, out_f), lambda i: (0, 0))],
            out_specs=pl.BlockSpec((2, out_f), lambda i: (0, 0)),
            compiler_params=pltpu.CompilerParams(
                dimension_semantics=("arbitrary",),
                vmem_limit_bytes=vmem_limit),
        )(h, w)
        ss = _fold_bn(stats, g, beta, n_true)

        # Pass 2: recompute y per chunk, apply folded scale/shift + ReLU ("parallel").
        layer_dtype = out_dtype if li == len(ws) - 1 else jnp.bfloat16
        apply_k = functools.partial(_apply_kernel, n_true=n_true, chunk=chunk,
                                    mask_rows=mask_rows)
        h = pl.pallas_call(
            apply_k,
            out_shape=jax.ShapeDtypeStruct((n_pad, out_f), layer_dtype),
            grid=(num_chunks,),
            in_specs=[pl.BlockSpec((chunk, in_f), lambda i: (i, 0)),
                      pl.BlockSpec((in_f, out_f), lambda i: (0, 0)),
                      pl.BlockSpec((2, out_f), lambda i: (0, 0))],
            out_specs=pl.BlockSpec((chunk, out_f), lambda i: (i, 0)),
            compiler_params=pltpu.CompilerParams(
                dimension_semantics=("parallel",),
                vmem_limit_bytes=vmem_limit),
        )(h, w, ss)
    return h[:n_true]


# ---------------------------------------------------------------------------
# Public wrapper
# ---------------------------------------------------------------------------
def _pad_rows(x2d, multiple):
    n = x2d.shape[0]
    n_pad = ((n + multiple - 1) // multiple) * multiple
    if n_pad == n:
        return x2d
    return jnp.zeros((n_pad, x2d.shape[1]), x2d.dtype).at[:n].set(x2d)


def mlp_encoder(x, ws, gb, *, out_dtype=jnp.bfloat16, chunk=1024,
                force_gridded=False):
    """x: [N, IN_SIZE] f32.  ws: 3 bf16 weights [in_pad, out_f].  gb: [8, 256] f32."""
    n = x.shape[0]
    # Cast activations to bf16 for DMA; zero-pad features to a lane-aligned 128.
    x_feat = jnp.zeros((n, IN_PAD), jnp.bfloat16).at[:, :x.shape[1]].set(
        x.astype(jnp.bfloat16))

    vmem_limit = _vmem_limit_bytes()
    # ~6 KiB/row peak footprint in the single-block design (bf16 in/out, f32 temps).
    single_block_rows = vmem_limit // (6 * 1024)
    use_gridded = force_gridded or n > single_block_rows

    if use_gridded:
        chunk = max(ROW_ALIGN, (chunk // ROW_ALIGN) * ROW_ALIGN)
        x_in = _pad_rows(x_feat, chunk)
        return _mlp_encoder_gridded(x_in, ws, gb, n, out_dtype, chunk, vmem_limit)

    x_in = _pad_rows(x_feat, ROW_ALIGN)
    return _mlp_encoder_fused(x_in, ws, gb, n, out_dtype, vmem_limit)


# ---------------------------------------------------------------------------
# Parameter init / packing
# ---------------------------------------------------------------------------
def init_params(key):
    """PyTorch-style params: (w[in_f,out_f], b[out_f], gamma[out_f], beta[out_f])."""
    dims = [IN_SIZE] + HIDDEN
    params = []
    for i in range(len(dims) - 1):
        in_f, out_f = dims[i], dims[i + 1]
        key, kw, kb = jax.random.split(key, 3)
        bound = 1.0 / float(in_f) ** 0.5
        w = jax.random.uniform(kw, (in_f, out_f), jnp.float32, -bound, bound)
        b = jax.random.uniform(kb, (out_f,), jnp.float32, -bound, bound)
        params.append((w, b, jnp.ones((out_f,), jnp.float32),
                       jnp.zeros((out_f,), jnp.float32)))
    return params


def pack_params(params):
    """Zero-pad W1 rows to IN_PAD, cast weights to bf16, pack gamma/beta to [8,256]."""
    in_dims = [IN_PAD, HIDDEN[0], HIDDEN[1]]
    ws = []
    gb = jnp.zeros((8, MAX_F), jnp.float32)
    for i, (w, b, g, beta) in enumerate(params):
        in_f, out_f = w.shape
        wp = jnp.zeros((in_dims[i], out_f), jnp.float32).at[:in_f, :].set(w)
        ws.append(wp.astype(jnp.bfloat16))
        gb = gb.at[2 * i, :out_f].set(g)
        gb = gb.at[2 * i + 1, :out_f].set(beta)
    return ws, gb


# ---------------------------------------------------------------------------
# References
# ---------------------------------------------------------------------------
def mlp_encoder_ref_f32(x, params):
    """Exact PyTorch forward semantics (Linear+bias -> train-mode BN -> ReLU), f32."""
    h = x
    for (w, b, g, beta) in params:
        y = h @ w + b
        mean = jnp.mean(y, axis=0, keepdims=True)
        var = jnp.mean((y - mean) ** 2, axis=0, keepdims=True)
        y = (y - mean) / jnp.sqrt(var + BN_EPS) * g + beta
        h = jnp.maximum(y, 0.0)
    return h


def mlp_encoder_ref_mixed(x, params):
    """Mirror of the kernel math (bf16 matmul operands, f32 accum/BN, bias dropped)."""
    h = x
    for (w, b, g, beta) in params:
        y = jnp.dot(h.astype(jnp.bfloat16), w.astype(jnp.bfloat16),
                    preferred_element_type=jnp.float32)
        n = y.shape[0]
        s1 = jnp.sum(y, axis=0, keepdims=True)
        s2 = jnp.sum(y * y, axis=0, keepdims=True)
        mean = s1 / n
        var = jnp.maximum(s2 / n - mean * mean, 0.0)
        scale = g * jax.lax.rsqrt(var + BN_EPS)
        shift = beta - mean * scale
        h = jnp.maximum(y * scale + shift, 0.0)
    return h


# ---------------------------------------------------------------------------
if __name__ == "__main__":
    key = jax.random.PRNGKey(0)
    key, kx = jax.random.split(key)

    # Small-N single-block fast path (N=24 exercises the 16-row padding + mask).
    N = 24
    x = jax.random.normal(kx, (N, IN_SIZE), jnp.float32)
    params = init_params(key)
    ws, gb = pack_params(params)

    out = mlp_encoder(x, ws, gb, out_dtype=jnp.bfloat16)
    out = jax.block_until_ready(out)
    assert out.shape == (N, HIDDEN[-1]), out.shape
    out_f32 = out.astype(jnp.float32)

    ref_mixed = mlp_encoder_ref_mixed(x, params)
    err_mixed = float(jnp.max(jnp.abs(out_f32 - ref_mixed)))
    assert jnp.allclose(out_f32, ref_mixed, atol=2e-2, rtol=2e-2), err_mixed

    ref_f32 = mlp_encoder_ref_f32(x, params)
    err_f32 = float(jnp.max(jnp.abs(out_f32 - ref_f32)))
    assert jnp.allclose(out_f32, ref_f32, atol=5e-2, rtol=5e-2), err_f32

    # Gridded two-pass path (forced at a small N with small chunks to exercise
    # multi-chunk stats accumulation + ragged-batch masking).
    N2 = 90
    x2 = jax.random.normal(jax.random.PRNGKey(1), (N2, IN_SIZE), jnp.float32)
    out2 = mlp_encoder(x2, ws, gb, out_dtype=jnp.float32,
                       force_gridded=True, chunk=32)
    out2 = jax.block_until_ready(out2)
    assert out2.shape == (N2, HIDDEN[-1]), out2.shape
    ref2 = mlp_encoder_ref_f32(x2, params)
    err2 = float(jnp.max(jnp.abs(out2 - ref2)))
    assert jnp.allclose(out2, ref2, atol=5e-2, rtol=5e-2), err2

    print("KERNEL_OK")
</pallas_src>

<mosaic_0001>
module attributes {stable_mosaic.version = 11 : i64} {
  func.func @_fused_kernel(%arg0: memref<32x128xbf16, #tpu.memory_space<vmem>>, %arg1: memref<128x128xbf16, #tpu.memory_space<vmem>>, %arg2: memref<128x128xbf16, #tpu.memory_space<vmem>>, %arg3: memref<128x256xbf16, #tpu.memory_space<vmem>>, %arg4: memref<8x256xf32, #tpu.memory_space<vmem>>, %arg5: memref<32x256xbf16, #tpu.memory_space<vmem>>) attributes {dimension_semantics = [], scalar_prefetch = 0 : i64, scratch_operands = 0 : i64, tpu.core_type = #tpu.core_type<tc>} {
    %0 = tpu.iota {dimensions = array<i32: 0>} : vector<32x1xi32>
    %c24_i32 = arith.constant 24 : i32
    %1 = vector.broadcast %c24_i32 : i32 to vector<32x1xi32>
    %2 = arith.cmpi slt, %0, %1 : vector<32x1xi32>
    %c0 = arith.constant 0 : index
    %c0_0 = arith.constant 0 : index
    %3 = vector.load %arg0[%c0, %c0_0] : memref<32x128xbf16, #tpu.memory_space<vmem>>, vector<32x128xbf16>
    %c0_1 = arith.constant 0 : index
    %c0_2 = arith.constant 0 : index
    %4 = vector.load %arg4[%c0_1, %c0_2] : memref<8x256xf32, #tpu.memory_space<vmem>>, vector<1x128xf32>
    %c1 = arith.constant 1 : index
    %c0_3 = arith.constant 0 : index
    %5 = vector.load %arg4[%c1, %c0_3] : memref<8x256xf32, #tpu.memory_space<vmem>>, vector<1x128xf32>
    %c0_4 = arith.constant 0 : index
    %c0_5 = arith.constant 0 : index
    %6 = vector.load %arg1[%c0_4, %c0_5] : memref<128x128xbf16, #tpu.memory_space<vmem>>, vector<128x128xbf16>
    %cst = arith.constant dense<0.000000e+00> : vector<32x128xf32>
    %7 = tpu.matmul %3, %6, %cst {dimension_numbers = #tpu.dot_dimension_numbers<[1], [0], [0], [1], [0, 0, 1, 1], [], []>} : vector<32x128xbf16>, vector<128x128xbf16>, vector<32x128xf32> -> vector<32x128xf32>
    %cst_6 = arith.constant dense<0.000000e+00> : vector<128xf32>
    %8 = vector.multi_reduction <add>, %7, %cst_6 [0] : vector<32x128xf32> to vector<128xf32>
    %9 = vector.shape_cast %8 : vector<128xf32> to vector<1x128xf32>
    %10 = arith.mulf %7, %7 : vector<32x128xf32>
    %cst_7 = arith.constant dense<0.000000e+00> : vector<128xf32>
    %11 = vector.multi_reduction <add>, %10, %cst_7 [0] : vector<32x128xf32> to vector<128xf32>
    %12 = vector.shape_cast %11 : vector<128xf32> to vector<1x128xf32>
    %cst_8 = arith.constant 0.0416666679 : f32
    %13 = vector.broadcast %cst_8 : f32 to vector<1x128xf32>
    %14 = arith.mulf %9, %13 : vector<1x128xf32>
    %cst_9 = arith.constant 0.0416666679 : f32
    %15 = vector.broadcast %cst_9 : f32 to vector<1x128xf32>
    %16 = arith.mulf %12, %15 : vector<1x128xf32>
    %17 = arith.mulf %14, %14 : vector<1x128xf32>
    %18 = arith.subf %16, %17 : vector<1x128xf32>
    %cst_10 = arith.constant 0.000000e+00 : f32
    %19 = vector.broadcast %cst_10 : f32 to vector<1x128xf32>
    %20 = arith.maximumf %18, %19 : vector<1x128xf32>
    %cst_11 = arith.constant 9.99999974E-6 : f32
    %21 = vector.broadcast %cst_11 : f32 to vector<1x128xf32>
    %22 = arith.addf %20, %21 : vector<1x128xf32>
    %23 = math.rsqrt %22 : vector<1x128xf32>
    %24 = arith.mulf %4, %23 : vector<1x128xf32>
    %25 = arith.mulf %14, %24 : vector<1x128xf32>
    %26 = arith.subf %5, %25 : vector<1x128xf32>
    %27 = vector.broadcast %24 : vector<1x128xf32> to vector<32x128xf32>
    %28 = arith.mulf %7, %27 : vector<32x128xf32>
    %29 = vector.broadcast %26 : vector<1x128xf32> to vector<32x128xf32>
    %30 = arith.addf %28, %29 : vector<32x128xf32>
    %cst_12 = arith.constant 0.000000e+00 : f32
    %31 = vector.broadcast %cst_12 : f32 to vector<32x128xf32>
    %32 = arith.maximumf %30, %31 : vector<32x128xf32>
    %cst_13 = arith.constant 0.000000e+00 : f32
    %33 = vector.shape_cast %2 : vector<32x1xi1> to vector<32x1xi1>
    %34 = vector.broadcast %33 : vector<32x1xi1> to vector<32x128xi1>
    %35 = vector.broadcast %cst_13 : f32 to vector<32x128xf32>
    %36 = arith.select %34, %32, %35 : vector<32x128xi1>, vector<32x128xf32>
    %37 = arith.truncf %36 : vector<32x128xf32> to vector<32x128xbf16>
    %c2 = arith.constant 2 : index
    %c0_14 = arith.constant 0 : index
    %38 = vector.load %arg4[%c2, %c0_14] : memref<8x256xf32, #tpu.memory_space<vmem>>, vector<1x128xf32>
    %c3 = arith.constant 3 : index
    %c0_15 = arith.constant 0 : index
    %39 = vector.load %arg4[%c3, %c0_15] : memref<8x256xf32, #tpu.memory_space<vmem>>, vector<1x128xf32>
    %c0_16 = arith.constant 0 : index
    %c0_17 = arith.constant 0 : index
    %40 = vector.load %arg2[%c0_16, %c0_17] : memref<128x128xbf16, #tpu.memory_space<vmem>>, vector<128x128xbf16>
    %cst_18 = arith.constant dense<0.000000e+00> : vector<32x128xf32>
    %41 = tpu.matmul %37, %40, %cst_18 {dimension_numbers = #tpu.dot_dimension_numbers<[1], [0], [0], [1], [0, 0, 1, 1], [], []>} : vector<32x128xbf16>, vector<128x128xbf16>, vector<32x128xf32> -> vector<32x128xf32>
    %cst_19 = arith.constant dense<0.000000e+00> : vector<128xf32>
    %42 = vector.multi_reduction <add>, %41, %cst_19 [0] : vector<32x128xf32> to vector<128xf32>
    %43 = vector.shape_cast %42 : vector<128xf32> to vector<1x128xf32>
    %44 = arith.mulf %41, %41 : vector<32x128xf32>
    %cst_20 = arith.constant dense<0.000000e+00> : vector<128xf32>
    %45 = vector.multi_reduction <add>, %44, %cst_20 [0] : vector<32x128xf32> to vector<128xf32>
    %46 = vector.shape_cast %45 : vector<128xf32> to vector<1x128xf32>
    %cst_21 = arith.constant 0.0416666679 : f32
    %47 = vector.broadcast %cst_21 : f32 to vector<1x128xf32>
    %48 = arith.mulf %43, %47 : vector<1x128xf32>
    %cst_22 = arith.constant 0.0416666679 : f32
    %49 = vector.broadcast %cst_22 : f32 to vector<1x128xf32>
    %50 = arith.mulf %46, %49 : vector<1x128xf32>
    %51 = arith.mulf %48, %48 : vector<1x128xf32>
    %52 = arith.subf %50, %51 : vector<1x128xf32>
    %cst_23 = arith.constant 0.000000e+00 : f32
    %53 = vector.broadcast %cst_23 : f32 to vector<1x128xf32>
    %54 = arith.maximumf %52, %53 : vector<1x128xf32>
    %cst_24 = arith.constant 9.99999974E-6 : f32
    %55 = vector.broadcast %cst_24 : f32 to vector<1x128xf32>
    %56 = arith.addf %54, %55 : vector<1x128xf32>
    %57 = math.rsqrt %56 : vector<1x128xf32>
    %58 = arith.mulf %38, %57 : vector<1x128xf32>
    %59 = arith.mulf %48, %58 : vector<1x128xf32>
    %60 = arith.subf %39, %59 : vector<1x128xf32>
    %61 = vector.broadcast %58 : vector<1x128xf32> to vector<32x128xf32>
    %62 = arith.mulf %41, %61 : vector<32x128xf32>
    %63 = vector.broadcast %60 : vector<1x128xf32> to vector<32x128xf32>
    %64 = arith.addf %62, %63 : vector<32x128xf32>
    %cst_25 = arith.constant 0.000000e+00 : f32
    %65 = vector.broadcast %cst_25 : f32 to vector<32x128xf32>
    %66 = arith.maximumf %64, %65 : vector<32x128xf32>
    %cst_26 = arith.constant 0.000000e+00 : f32
    %67 = vector.shape_cast %2 : vector<32x1xi1> to vector<32x1xi1>
    %68 = vector.broadcast %67 : vector<32x1xi1> to vector<32x128xi1>
    %69 = vector.broadcast %cst_26 : f32 to vector<32x128xf32>
    %70 = arith.select %68, %66, %69 : vector<32x128xi1>, vector<32x128xf32>
    %71 = arith.truncf %70 : vector<32x128xf32> to vector<32x128xbf16>
    %c4 = arith.constant 4 : index
    %c0_27 = arith.constant 0 : index
    %72 = vector.load %arg4[%c4, %c0_27] : memref<8x256xf32, #tpu.memory_space<vmem>>, vector<1x256xf32>
    %c5 = arith.constant 5 : index
    %c0_28 = arith.constant 0 : index
    %73 = vector.load %arg4[%c5, %c0_28] : memref<8x256xf32, #tpu.memory_space<vmem>>, vector<1x256xf32>
    %c0_29 = arith.constant 0 : index
    %c0_30 = arith.constant 0 : index
    %74 = vector.load %arg3[%c0_29, %c0_30] : memref<128x256xbf16, #tpu.memory_space<vmem>>, vector<128x256xbf16>
    %cst_31 = arith.constant dense<0.000000e+00> : vector<32x256xf32>
    %75 = tpu.matmul %71, %74, %cst_31 {dimension_numbers = #tpu.dot_dimension_numbers<[1], [0], [0], [1], [0, 0, 1, 1], [], []>} : vector<32x128xbf16>, vector<128x256xbf16>, vector<32x256xf32> -> vector<32x256xf32>
    %cst_32 = arith.constant dense<0.000000e+00> : vector<256xf32>
    %76 = vector.multi_reduction <add>, %75, %cst_32 [0] : vector<32x256xf32> to vector<256xf32>
    %77 = vector.shape_cast %76 : vector<256xf32> to vector<1x256xf32>
    %78 = arith.mulf %75, %75 : vector<32x256xf32>
    %cst_33 = arith.constant dense<0.000000e+00> : vector<256xf32>
    %79 = vector.multi_reduction <add>, %78, %cst_33 [0] : vector<32x256xf32> to vector<256xf32>
    %80 = vector.shape_cast %79 : vector<256xf32> to vector<1x256xf32>
    %cst_34 = arith.constant 0.0416666679 : f32
    %81 = vector.broadcast %cst_34 : f32 to vector<1x256xf32>
    %82 = arith.mulf %77, %81 : vector<1x256xf32>
    %cst_35 = arith.constant 0.0416666679 : f32
    %83 = vector.broadcast %cst_35 : f32 to vector<1x256xf32>
    %84 = arith.mulf %80, %83 : vector<1x256xf32>
    %85 = arith.mulf %82, %82 : vector<1x256xf32>
    %86 = arith.subf %84, %85 : vector<1x256xf32>
    %cst_36 = arith.constant 0.000000e+00 : f32
    %87 = vector.broadcast %cst_36 : f32 to vector<1x256xf32>
    %88 = arith.maximumf %86, %87 : vector<1x256xf32>
    %cst_37 = arith.constant 9.99999974E-6 : f32
    %89 = vector.broadcast %cst_37 : f32 to vector<1x256xf32>
    %90 = arith.addf %88, %89 : vector<1x256xf32>
    %91 = math.rsqrt %90 : vector<1x256xf32>
    %92 = arith.mulf %72, %91 : vector<1x256xf32>
    %93 = arith.mulf %82, %92 : vector<1x256xf32>
    %94 = arith.subf %73, %93 : vector<1x256xf32>
    %95 = vector.broadcast %92 : vector<1x256xf32> to vector<32x256xf32>
    %96 = arith.mulf %75, %95 : vector<32x256xf32>
    %97 = vector.broadcast %94 : vector<1x256xf32> to vector<32x256xf32>
    %98 = arith.addf %96, %97 : vector<32x256xf32>
    %cst_38 = arith.constant 0.000000e+00 : f32
    %99 = vector.broadcast %cst_38 : f32 to vector<32x256xf32>
    %100 = arith.maximumf %98, %99 : vector<32x256xf32>
    %cst_39 = arith.constant 0.000000e+00 : f32
    %101 = vector.shape_cast %2 : vector<32x1xi1> to vector<32x1xi1>
    %102 = vector.broadcast %101 : vector<32x1xi1> to vector<32x256xi1>
    %103 = vector.broadcast %cst_39 : f32 to vector<32x256xf32>
    %104 = arith.select %102, %100, %103 : vector<32x256xi1>, vector<32x256xf32>
    %105 = arith.truncf %104 : vector<32x256xf32> to vector<32x256xbf16>
    %c0_40 = arith.constant 0 : index
    %c0_41 = arith.constant 0 : index
    %106 = vector.load %arg5[%c0_40, %c0_41] : memref<32x256xbf16, #tpu.memory_space<vmem>>, vector<32x256xbf16>
    tpu.vector_store %arg5[%c0_40, %c0_41], %105 {strides = array<i32>} : memref<32x256xbf16, #tpu.memory_space<vmem>>, vector<32x256xbf16>,
    return
  }
}

</mosaic_0001>

<bundles_post_ra>
// kernel: tpu_custom_call.1
= control target key start
LH: loop header
LB: loop body
LE: loop exit
PB: predicated region body
PF: predicated region fallthrough
CT: control target
= control target key end

     0   :  { %10 = vsyncpa [#allocation3], 0  ;;  %s1196_s0 = inlined_call_operand.hbm [shape: bf16[32,128], index: 0, kind: input, shape index: {}]   ;;  %s1197_s1 = inlined_call_operand.hbm [shape: bf16[128,128], index: 1, kind: input, shape index: {}]   ;;  %s1198_s2 = inlined_call_operand.hbm [shape: bf16[128,128], index: 2, kind: input, shape index: {}]   ;;  %s1199_s3 = inlined_call_operand.hbm [shape: bf16[128,256], index: 3, kind: input, shape index: {}]   ;;  %s1200_s4 = inlined_call_operand.hbm [shape: f32[8,256], index: 4, kind: input, shape index: {}]   ;;  %s1201_s5 = inlined_call_operand.hbm [shape: bf16[32,256], index: 5, kind: output, shape index: {}]  }
   0x1   :  { %11 = vsyncpa [#allocation6], 0 }
   0x2   :  { %12 = vsyncpa [#allocation9], 0 }
   0x3   :  { %13 = vsyncpa [#allocation4], 0  ;;  %s31_s20 = sshll.u32 %s1197_s1, 4  ;;  %s1059_s21 = smov [#allocation5]   ;;  %s32_s20 = int_to_ptr.hbm [resolvable:$true] %s31_s20 }
   0x4   :  { %s33_s22 = sshll.u32 %s1059_s21, 4  ;;  %s57_s25 = sshll.u32 %s1199_s3, 4  ;;  %s34_s22 = int_to_ptr.vmem [resolvable:$true] %s33_s22  ;;  %s58_s25 = int_to_ptr.hbm [resolvable:$true] %s57_s25 }
   0x5   :  { %s1060_s26 = smov 64   ;;  %s1061_s27 = smov 4  }
   0x6   :  { %39 = dma.hbm_to_vmem [thread:$0]  %s32_s20, 1024, %s34_s22, [#allocation6], %s1060_s26, %s1060_s26, %s1061_s27  }
   0x7   :  { %s1062_s28 = smov [#allocation8]   ;;  %s1063_s30 = smov 128  }
   0x8   :  { %s59_s29 = sshll.u32 %s1062_s28, 4  ;;  %s1064_s6 = smov 8   ;;  %s60_s29 = int_to_ptr.vmem [resolvable:$true] %s59_s29 }
   0x9   :  { %65 = dma.hbm_to_vmem [thread:$0]  %s58_s25, 2048, %s60_s29, [#allocation9], %s1063_s30, %s1063_s30, %s1064_s6  }
   0xa   :  { %s18_s8 = sshll.u32 %s1196_s0, 4  ;;  %s1065_s9 = smov [#allocation2]   ;;  %s19_s8 = int_to_ptr.hbm [resolvable:$true] %s18_s8 }
   0xb   :  { %s20_s3 = sshll.u32 %s1065_s9, 4  ;;  %s44_s12 = sshll.u32 %s1198_s2, 4  ;;  %s21_s3 = int_to_ptr.vmem [resolvable:$true] %s20_s3  ;;  %s45_s12 = int_to_ptr.hbm [resolvable:$true] %s44_s12 }
   0xc   :  { %26 = dma.hbm_to_vmem [thread:$0]  %s19_s8, 256, %s21_s3, [#allocation3], %s1060_s26, %s1060_s26, %s1061_s27  }
   0xd   :  { %s1066_s13 = smov [#allocation7]   ;;  %s71_s17 = sshll.u32 %s1200_s4, 4  ;;  %s72_s17 = int_to_ptr.hbm [resolvable:$true] %s71_s17 }
   0xe   :  { %s46_s14 = sshll.u32 %s1066_s13, 4  ;;  %s1067_s0 = smov [#allocation10]   ;;  %s47_s14 = int_to_ptr.vmem [resolvable:$true] %s46_s14 }
   0xf   :  { %52 = dma.hbm_to_vmem [thread:$0]  %s45_s12, 1024, %s47_s14, [#allocation6], %s1060_s26, %s1060_s26, %s1061_s27  }
  0x10   :  { %s73_s18 = sshll.u32 %s1067_s0, 4  ;;  %s74_s18 = int_to_ptr.vmem [resolvable:$true] %s73_s18 }
  0x11   :  { %76 = dma.hbm_to_vmem [thread:$0]  %s72_s17, 256, %s74_s18, [#allocation9]  }
  0x12   :  { %1051 = dma.done.wait [#allocation3], 256  }
  0x13   :  { %1052 = vsyncadd [#allocation3], 4294967040 }
  0x14   :  { %1053 = dma.done.wait [#allocation6], 2048  }
  0x15   :  { %1054 = vsyncadd [#allocation6], 4294965248 }
  0x16   :  { %1055 = dma.done.wait [#allocation9], 2304  }
  0x17   :  { %1056 = vsyncadd [#allocation9], 4294964992  ;;  %v863_v0 = vld [vmem:[#allocation5 + $0x38] sm:$0xff]  ;;  %v862_v1 = vld [vmem:[#allocation5 + $0x30] sm:$0xff]  ;;  %vm635_vm11 = vcmask 1040384   ;;  %s1069_s2 = smov [#allocation11]  }
  0x18   :  { %188 = vmatpush.bf16.msra.mxu0 %v863_v0  ;;  %v861_v2 = vld [vmem:[#allocation5 + $0x28] sm:$0xff]  ;;  %v860_v3 = vld [vmem:[#allocation5 + $0x20] sm:$0xff]  ;;  %v859_v4 = vld [vmem:[#allocation5 + $0x18] sm:$0xff]  ;;  %s701_s4 = sshll.u32 %s1069_s2, 4  ;;  %s703_s21 = sshll.u32 %s1201_s5, 4  ;;  %s702_s4 = int_to_ptr.vmem [resolvable:$true] %s701_s4  ;;  %s704_s21 = int_to_ptr.hbm [resolvable:$true] %s703_s21 }
  0x19   :  { %v858_v5 = vld [vmem:[#allocation5 + $0x10] sm:$0xff]  ;;  %v857_v6 = vld [vmem:[#allocation5 + $0x8] sm:$0xff]  ;;  %v856_v7 = vld [vmem:[#allocation5] sm:$0xff] }
  0x1a   :  { %v854_v8 = vld [vmem:[#allocation2] sm:$0xff]  ;;  %v855_v9 = vld [vmem:[#allocation2 + $0x8] sm:$0xff]  ;;  %v869_v19 = vld [vmem:[#allocation7 + $0x28] sm:$0xff] }
  0x1b   :  { %v871_v12 = vld [vmem:[#allocation7 + $0x38] sm:$0xff]  ;;  %v870_v14 = vld [vmem:[#allocation7 + $0x30] sm:$0xff]  ;;  %v868_v26 = vld [vmem:[#allocation7 + $0x20] sm:$0xff] }
  0x1c   :  { %189 = vmatpush.bf16.msra.mxu0 %v862_v1  ;;  %340 = vmatpush.bf16.msra.mxu1 %v871_v12  ;;  %v867_v31 = vld [vmem:[#allocation7 + $0x18] sm:$0xff]  ;;  %v866_v36 = vld [vmem:[#allocation7 + $0x10] sm:$0xff]  ;;  %v865_v41 = vld [vmem:[#allocation7 + $0x8] sm:$0xff] }
  0x1d   :  { %v864_v44 = vld [vmem:[#allocation7] sm:$0xff] }
  0x1e   :  { %v110_v55 = vld [vmem:[#allocation10] ss:$0 sm:$0xff]  ;;  %v111_v59 = vld [vmem:[#allocation10 + $0x1] ss:$0 sm:$0xff] }
  0x20   :  { %190 = vmatpush.bf16.msra.mxu0 %v861_v2  ;;  %341 = vmatpush.bf16.msra.mxu1 %v870_v14  ;;  %v848_v14 = vld [vmem:[#allocation8 + $0x70] sm:$0xf] }
  0x24   :  { %191 = vmatpush.bf16.msra.mxu0 %v860_v3  ;;  %342 = vmatpush.bf16.msra.mxu1 %v869_v19  ;;  %v840_v19 = vld [vmem:[#allocation8 + $0x60] sm:$0xf] }
  0x28   :  { %192 = vmatpush.bf16.msra.mxu0 %v859_v4  ;;  %343 = vmatpush.bf16.msra.mxu1 %v868_v26 }
  0x2c   :  { %193 = vmatpush.bf16.msra.mxu0 %v858_v5  ;;  %344 = vmatpush.bf16.msra.mxu1 %v867_v31 }
  0x30   :  { %194 = vmatpush.bf16.msra.mxu0 %v857_v6  ;;  %345 = vmatpush.bf16.msra.mxu1 %v866_v36 }
  0x34   :  { %195 = vmatpush.bf16.msra.mxu0 %v856_v7  ;;  %346 = vmatpush.bf16.msra.mxu1 %v865_v41  ;;  %v881_v41 = vld [vmem:[#allocation8 + $0x44] sm:$0xf0] }
  0x37   :  { %196 = vmatmul.bf16.vlgmr.msra.gmra.mxu0 %v854_v8 }
  0x38   :  { %347 = vmatpush.bf16.msra.mxu1 %v864_v44  ;;  %v826_v44 = vld [vmem:[#allocation8 + $0x48] sm:$0xf0] }
  0x47   :  { %201 = vmatmul.bf16.gmra.mxu0 %v855_v9 }
  0xb4   :  { %v1118_v10 = vpop.f32.mrf.mxu0 }
  0xb5   :  { %v216_v16 = vmul.f32 %v1118_v10, %v1118_v10 }
  0xbc   :  { %v1120_v11 = vpop.f32.mrf.mxu0 }
  0xbd   :  { %v217_v15 = vmul.f32 %v1120_v11, %v1120_v11  ;;  %v207_v17 = vadd.f32 %v1120_v11, %v1118_v10 }
  0xbf   :  { %v220_v20 = vadd.f32 %v217_v15, %v216_v16  ;;  %v886_v15 = vld [vmem:[#allocation8 + $0x74] sm:$0xf]  ;;  %v850_v16 = vld [vmem:[#allocation8 + $0x78] sm:$0xf0] }
  0xc4   :  { %v1122_v13 = vpop.f32.mrf.mxu0 }
  0xc5   :  { %v218_v18 = vmul.f32 %v1122_v13, %v1122_v13  ;;  %v208_v21 = vadd.f32 %v207_v17, %v1122_v13  ;;  %v853_v17 = vor.u32 %v886_v15, %v850_v16  ;;  %v792_v15 = vld [vmem:[#allocation8] sm:$0xf] }
  0xc7   :  { %v221_v25 = vadd.f32 %v220_v20, %v218_v18  ;;  %537 = vmatpush.bf16.msra.mxu3 %v853_v17  ;;  %v884_v20 = vld [vmem:[#allocation8 + $0x64] sm:$0xf] }
  0xcc   :  { %v204_v22 = vpop.f32.mrf.mxu0 }
  0xcd   :  { %v209_v23 = vadd.f32 %v208_v21, %v204_v22  ;;  %v219_v24 = vmul.f32 %v204_v22, %v204_v22  ;;  %v842_v22 = vld [vmem:[#allocation8 + $0x68] sm:$0xf0] }
  0xcf   :  { %v210_v27 = vrot.slane %v209_v23, 4  ;;  %v222_v28 = vadd.f32 %v221_v25, %v219_v24  ;;  %v845_v24 = vor.u32 %v884_v20, %v842_v22 }
  0xd1   :  { %v211_v29 = vadd.f32 %v210_v27, %v209_v23  ;;  %v223_v30 = vrot.slane %v222_v28, 4  ;;  %538 = vmatpush.bf16.msra.mxu3 %v845_v24 }
  0xd3   :  { %v212_v32 = vrot.slane %v211_v29, 2  ;;  %v224_v33 = vadd.f32 %v223_v30, %v222_v28  ;;  %v832_v28 = vld [vmem:[#allocation8 + $0x50] sm:$0xf]  ;;  %v882_v30 = vld [vmem:[#allocation8 + $0x54] sm:$0xf] }
  0xd5   :  { %v213_v34 = vadd.f32 %v212_v32, %v211_v29  ;;  %v225_v35 = vrot.slane %v224_v33, 2  ;;  %v883_v29 = vld [vmem:[#allocation8 + $0x54] sm:$0xf0]  ;;  %v834_v32 = vld [vmem:[#allocation8 + $0x58] sm:$0xf0] }
  0xd6   :  { %v833_v31 = vor.u32 %v883_v29, %v832_v28 }
  0xd7   :  { %v214_v37 = vrot.slane %v213_v34, 1  ;;  %v226_v38 = vadd.f32 %v225_v35, %v224_v33  ;;  %v837_v35 = vor.u32 %v882_v30, %v834_v32 }
  0xd9   :  { %v215_v39 = vadd.f32 %v214_v37, %v213_v34  ;;  %v227_v40 = vrot.slane %v226_v38, 1  ;;  %539 = vmatpush.bf16.msra.mxu3 %v837_v35 }
  0xdb   :  { %v228_v42 = vadd.f32 %v227_v40, %v226_v38  ;;  %v229_v43 = vmul.f32 0.041666668, %v215_v39  ;;  %v824_v40 = vld [vmem:[#allocation8 + $0x40] sm:$0xf] }
  0xdd   :  { %v230_v45 = vmul.f32 0.041666668, %v228_v42  ;;  %v231_v46 = vmul.f32 %v229_v43, %v229_v43  ;;  %v880_v42 = vld [vmem:[#allocation8 + $0x44] sm:$0xf] }
  0xdf   :  { %v232_v47 = vsub.f32 %v230_v45, %v231_v46 }
  0xe1   :  { %v233_v48 = vmax.f32 %v232_v47, 0.0  ;;  %v829_v47 = vor.u32 %v880_v42, %v826_v44 }
  0xe3   :  { %v234_v49 = vadd.f32 1e-05, %v233_v48  ;;  %540 = vmatpush.bf16.msra.mxu3 %v829_v47 }
  0xe5   :  { %899 = vrsqrt.f32 %v234_v49  ;;  %vm241_vm1 = vweird.f32 %v234_v49 }
  0xeb   :  { %v900_v50 = vpop.eup %899 }
  0xec   :  { %v236_v51 = vmul.f32 %v900_v50, %v234_v49  ;;  %vm242_vm0 = vweird.f32 %v900_v50 }
  0xed   :  { %vm243_vm2 = vmor %vm241_vm1, %vm242_vm0 }
  0xee   :  { %v237_v52 = vmul.f32 %v900_v50, %v236_v51  ;;  %v879_v51 = vld [vmem:[#allocation8 + $0x34] sm:$0xf0] }
  0xf0   :  { %v238_v53 = vmul.f32 0.5, %v237_v52 }
  0xf2   :  { %v239_v54 = vsub.f32 1.5, %v238_v53  ;;  %v878_v53 = vld [vmem:[#allocation8 + $0x34] sm:$0xf] }
  0xf4   :  { %v240_v56 = vmul.f32 %v900_v50, %v239_v54  ;;  %v818_v54 = vld [vmem:[#allocation8 + $0x38] sm:$0xf0] }
  0xf6   :  { %v244_v57 = vsel %vm243_vm2, %v900_v50, %v240_v56  ;;  %v816_v50 = vld [vmem:[#allocation8 + $0x30] sm:$0xf] }
  0xf7   :  { %v245_v58 = vmul.f32 %v244_v57, %v110_v55  ;;  %v817_v52 = vor.u32 %v879_v51, %v816_v50  ;;  %v821_v57 = vor.u32 %v878_v53, %v818_v54 }
  0xf9   :  { %v246_v60 = vmul.f32 %v245_v58, %v229_v43  ;;  %v248_v62 = vmul.f32 %v245_v58, %v1118_v10  ;;  %v249_v63 = vmul.f32 %v245_v58, %v1120_v11  ;;  %v250_v5 = vmul.f32 %v245_v58, %v1122_v13  ;;  %v887_v10 = vld [vmem:[#allocation8 + $0x74] sm:$0xf0]  ;;  %v885_v13 = vld [vmem:[#allocation8 + $0x64] sm:$0xf0]  ;;  %541 = vmatpush.bf16.msra.mxu3 %v821_v57 }
  0xfa   :  { %v849_v11 = vor.u32 %v887_v10, %v848_v14  ;;  %v841_v21 = vor.u32 %v885_v13, %v840_v19  ;;  %v825_v43 = vor.u32 %v881_v41, %v824_v40  ;;  %v874_v14 = vld [vmem:[#allocation8 + $0x14] sm:$0xf]  ;;  %v802_v10 = vld [vmem:[#allocation8 + $0x18] sm:$0xf0]  ;;  %v873_v19 = vld [vmem:[#allocation8 + $0x4] sm:$0xf0] }
  0xfb   :  { %v247_v61 = vsub.f32 %v111_v59, %v246_v60  ;;  %v808_v60 = vld [vmem:[#allocation8 + $0x20] sm:$0xf]  ;;  %v805_v17 = vor.u32 %v874_v14, %v802_v10  ;;  %v872_v13 = vld [vmem:[#allocation8 + $0x4] sm:$0xf]  ;;  %v793_v20 = vor.u32 %v873_v19, %v792_v15 }
  0xfc   :  { %518 = vmatpush.bf16.msra.mxu2 %v849_v11 }
  0xfd   :  { %v252_v0 = vadd.f32 %v248_v62, %v247_v61  ;;  %v253_v1 = vadd.f32 %v249_v63, %v247_v61  ;;  %v254_v6 = vadd.f32 %v250_v5, %v247_v61  ;;  %v877_v61 = vld [vmem:[#allocation8 + $0x24] sm:$0xf0]  ;;  %v876_v63 = vld [vmem:[#allocation8 + $0x24] sm:$0xf] }
  0xfe   :  { %v809_v62 = vor.u32 %v877_v61, %v808_v60 }
  0xff   :  { %v256_v2 = vmax.f32 %v252_v0, 0.0  ;;  %v257_v3 = vmax.f32 %v253_v1, 0.0  ;;  %v258_v7 = vmax.f32 %v254_v6, 0.0  ;;  %v810_v0 = vld [vmem:[#allocation8 + $0x28] sm:$0xf0] }
 0x100   :  { %519 = vmatpush.bf16.msra.mxu2 %v841_v21  ;;  %v800_v6 = vld [vmem:[#allocation8 + $0x10] sm:$0xf]  ;;  %v794_v21 = vld [vmem:[#allocation8 + $0x8] sm:$0xf0] }
 0x101   :  { %v272_v4 = vpack.c.bf16 %v257_v3, %v256_v2  ;;  %v273_v8 = vpack.c.bf16 0.0, %v258_v7  ;;  %v813_v3 = vor.u32 %v876_v63, %v810_v0  ;;  %v875_v7 = vld [vmem:[#allocation8 + $0x14] sm:$0xf0]  ;;  %v797_v24 = vor.u32 %v872_v13, %v794_v21 }
 0x103   :  { %348 = vmatmul.bf16.vlgmr.msra.gmra.mxu1 %v272_v4  ;;  %542 = vmatpush.bf16.msra.mxu3 %v813_v3 }
 0x104   :  { %520 = vmatpush.bf16.msra.mxu2 %v833_v31 }
 0x107   :  { %543 = vmatpush.bf16.msra.mxu3 %v805_v17 }
 0x108   :  { %521 = vmatpush.bf16.msra.mxu2 %v825_v43 }
 0x10b   :  { %544 = vmatpush.bf16.msra.mxu3 %v797_v24 }
 0x10c   :  { %522 = vmatpush.bf16.msra.mxu2 %v817_v52 }
 0x110   :  { %523 = vmatpush.bf16.msra.mxu2 %v809_v62 }
 0x113   :  { %353 = vmatmul.bf16.gmra.mxu1 %v273_v8  ;;  %v801_v8 = vor.u32 %v875_v7, %v800_v6 }
 0x115   :  { %524 = vmatpush.bf16.msra.mxu2 %v801_v8 }
 0x119   :  { %525 = vmatpush.bf16.msra.mxu2 %v793_v20 }
 0x180   :  { %v1136_v9 = vpop.f32.mrf.mxu1 }
 0x181   :  { %v368_v25 = vmul.f32 %v1136_v9, %v1136_v9 }
 0x188   :  { %v1138_v12 = vpop.f32.mrf.mxu1 }
 0x189   :  { %v369_v23 = vmul.f32 %v1138_v12, %v1138_v12  ;;  %v359_v26 = vadd.f32 %v1138_v12, %v1136_v9 }
 0x18b   :  { %v372_v33 = vadd.f32 %v369_v23, %v368_v25 }
 0x190   :  { %v1140_v18 = vpop.f32.mrf.mxu1 }
 0x191   :  { %v370_v27 = vmul.f32 %v1140_v18, %v1140_v18  ;;  %v360_v34 = vadd.f32 %v359_v26, %v1140_v18 }
 0x193   :  { %v373_v39 = vadd.f32 %v372_v33, %v370_v27  ;;  %v274_v33 = vld [vmem:[#allocation10 + $0x2] ss:$0 sm:$0xff] }
 0x198   :  { %v356_v36 = vpop.f32.mrf.mxu1 }
 0x199   :  { %v361_v37 = vadd.f32 %v360_v34, %v356_v36  ;;  %v371_v38 = vmul.f32 %v356_v36, %v356_v36 }
 0x19b   :  { %v362_v45 = vrot.slane %v361_v37, 4  ;;  %v374_v46 = vadd.f32 %v373_v39, %v371_v38 }
 0x19d   :  { %v363_v48 = vadd.f32 %v362_v45, %v361_v37  ;;  %v375_v49 = vrot.slane %v374_v46, 4  ;;  %v275_v37 = vld [vmem:[#allocation10 + $0x3] ss:$0 sm:$0xff] }
 0x19f   :  { %v364_v55 = vrot.slane %v363_v48, 2  ;;  %v376_v56 = vadd.f32 %v375_v49, %v374_v46 }
 0x1a1   :  { %v365_v58 = vadd.f32 %v364_v55, %v363_v48  ;;  %v377_v59 = vrot.slane %v376_v56, 2 }
 0x1a3   :  { %v366_v1 = vrot.slane %v365_v58, 1  ;;  %v378_v2 = vadd.f32 %v377_v59, %v376_v56 }
 0x1a5   :  { %v367_v4 = vadd.f32 %v366_v1, %v365_v58  ;;  %v379_v5 = vrot.slane %v378_v2, 1 }
 0x1a7   :  { %v380_v11 = vadd.f32 %v379_v5, %v378_v2  ;;  %v381_v16 = vmul.f32 0.041666668, %v367_v4 }
 0x1a9   :  { %v382_v22 = vmul.f32 0.041666668, %v380_v11  ;;  %v383_v23 = vmul.f32 %v381_v16, %v381_v16 }
 0x1ab   :  { %v384_v25 = vsub.f32 %v382_v22, %v383_v23 }
 0x1ad   :  { %v385_v26 = vmax.f32 %v384_v25, 0.0 }
 0x1af   :  { %v386_v27 = vadd.f32 1e-05, %v385_v26 }
 0x1b1   :  { %901 = vrsqrt.f32 %v386_v27  ;;  %vm393_vm4 = vweird.f32 %v386_v27 }
 0x1b7   :  { %v902_v28 = vpop.eup %901 }
 0x1b8   :  { %v388_v29 = vmul.f32 %v902_v28, %v386_v27  ;;  %vm394_vm3 = vweird.f32 %v902_v28 }
 0x1b9   :  { %vm395_vm5 = vmor %vm393_vm4, %vm394_vm3 }
 0x1ba   :  { %v389_v30 = vmul.f32 %v902_v28, %v388_v29 }
 0x1bc   :  { %v390_v31 = vmul.f32 0.5, %v389_v30 }
 0x1be   :  { %v391_v32 = vsub.f32 1.5, %v390_v31 }
 0x1c0   :  { %v392_v34 = vmul.f32 %v902_v28, %v391_v32 }
 0x1c2   :  { %v396_v35 = vsel %vm395_vm5, %v902_v28, %v392_v34 }
 0x1c3   :  { %v397_v36 = vmul.f32 %v396_v35, %v274_v33 }
 0x1c5   :  { %v398_v38 = vmul.f32 %v397_v36, %v381_v16  ;;  %v400_v40 = vmul.f32 %v397_v36, %v1136_v9  ;;  %v401_v41 = vmul.f32 %v397_v36, %v1138_v12  ;;  %v402_v47 = vmul.f32 %v397_v36, %v1140_v18 }
 0x1c7   :  { %v399_v39 = vsub.f32 %v275_v37, %v398_v38 }
 0x1c9   :  { %v404_v42 = vadd.f32 %v400_v40, %v399_v39  ;;  %v405_v43 = vadd.f32 %v401_v41, %v399_v39  ;;  %v406_v48 = vadd.f32 %v402_v47, %v399_v39 }
 0x1cb   :  { %v408_v44 = vmax.f32 %v404_v42, 0.0  ;;  %v409_v45 = vmax.f32 %v405_v43, 0.0  ;;  %v410_v49 = vmax.f32 %v406_v48, 0.0 }
 0x1cd   :  { %v416_v46 = vpack.c.bf16 %v409_v45, %v408_v44  ;;  %v417_v50 = vpack.c.bf16 0.0, %v410_v49 }
 0x1cf   :  { %526 = vmatmul.bf16.vlgmr.msra.gmra.mxu2 %v416_v46  ;;  %545 = vmatmul.bf16.vlgmr.msra.gmra.mxu3 %v416_v46 }
 0x1df   :  { %531 = vmatmul.bf16.gmra.mxu2 %v417_v50  ;;  %550 = vmatmul.bf16.gmra.mxu3 %v417_v50 }
 0x252   :  { %v1154_v51 = vpop.f32.mrf.mxu2  ;;  %v1156_v52 = vpop.f32.mrf.mxu3 }
 0x253   :  { %v574_v56 = vmul.f32 %v1154_v51, %v1154_v51  ;;  %v575_v57 = vmul.f32 %v1156_v52, %v1156_v52 }
 0x25a   :  { %v1158_v9 = vpop.f32.mrf.mxu2  ;;  %v1160_v12 = vpop.f32.mrf.mxu3 }
 0x25b   :  { %v576_v18 = vmul.f32 %v1158_v9, %v1158_v9  ;;  %v577_v55 = vmul.f32 %v1160_v12, %v1160_v12  ;;  %v556_v60 = vadd.f32 %v1158_v9, %v1154_v51  ;;  %v565_v61 = vadd.f32 %v1160_v12, %v1156_v52 }
 0x25d   :  { %v582_v62 = vadd.f32 %v576_v18, %v574_v56  ;;  %v591_v63 = vadd.f32 %v577_v55, %v575_v57 }
 0x262   :  { %v1162_v53 = vpop.f32.mrf.mxu2  ;;  %v1164_v54 = vpop.f32.mrf.mxu3 }
 0x263   :  { %v578_v58 = vmul.f32 %v1162_v53, %v1162_v53  ;;  %v579_v59 = vmul.f32 %v1164_v54, %v1164_v54  ;;  %v557_v0 = vadd.f32 %v556_v60, %v1162_v53  ;;  %v566_v1 = vadd.f32 %v565_v61, %v1164_v54 }
 0x264   :  { %v1068_v61 = vmov 0.0|0.0  }
 0x265   :  { %v583_v3 = vadd.f32 %v582_v62, %v578_v58  ;;  %v592_v5 = vadd.f32 %v591_v63, %v579_v59  ;;  %696 = vst [vmem:[#allocation11 + $0x18] sm:$0xff] %v1068_v61 }
 0x26a   :  { %v534_v2 = vpop.f32.mrf.mxu2  ;;  %v553_v4 = vpop.f32.mrf.mxu3 }
 0x26b   :  { %v558_v6 = vadd.f32 %v557_v0, %v534_v2  ;;  %v580_v7 = vmul.f32 %v534_v2, %v534_v2  ;;  %v567_v8 = vadd.f32 %v566_v1, %v553_v4  ;;  %v581_v14 = vmul.f32 %v553_v4, %v553_v4  ;;  %v419_v4 = vld [vmem:[#allocation10 + $0x4] ss:$8 sm:$0x3] }
 0x26d   :  { %v559_v10 = vrot.slane %v558_v6, 4  ;;  %v584_v15 = vadd.f32 %v583_v3, %v580_v7  ;;  %v568_v11 = vrot.slane %v567_v8, 4  ;;  %v593_v16 = vadd.f32 %v592_v5, %v581_v14 }
 0x26f   :  { %v560_v17 = vadd.f32 %v559_v10, %v558_v6  ;;  %v585_v19 = vrot.slane %v584_v15, 4  ;;  %v569_v13 = vadd.f32 %v568_v11, %v567_v8  ;;  %v594_v20 = vrot.slane %v593_v16, 4  ;;  %v421_v11 = vld [vmem:[#allocation10 + $0x5] ss:$8 sm:$0x3] }
 0x271   :  { %v561_v21 = vrot.slane %v560_v17, 2  ;;  %v586_v22 = vadd.f32 %v585_v19, %v584_v15  ;;  %v570_v23 = vrot.slane %v569_v13, 2  ;;  %v595_v24 = vadd.f32 %v594_v20, %v593_v16 }
 0x273   :  { %v562_v25 = vadd.f32 %v561_v21, %v560_v17  ;;  %v587_v26 = vrot.slane %v586_v22, 2  ;;  %v571_v27 = vadd.f32 %v570_v23, %v569_v13  ;;  %v596_v28 = vrot.slane %v595_v24, 2 }
 0x275   :  { %v563_v29 = vrot.slane %v562_v25, 1  ;;  %v588_v30 = vadd.f32 %v587_v26, %v586_v22  ;;  %v572_v31 = vrot.slane %v571_v27, 1  ;;  %v597_v32 = vadd.f32 %v596_v28, %v595_v24 }
 0x277   :  { %v564_v33 = vadd.f32 %v563_v29, %v562_v25  ;;  %v589_v34 = vrot.slane %v588_v30, 1  ;;  %v573_v35 = vadd.f32 %v572_v31, %v571_v27  ;;  %v598_v36 = vrot.slane %v597_v32, 1 }
 0x279   :  { %v590_v37 = vadd.f32 %v589_v34, %v588_v30  ;;  %v600_v38 = vmul.f32 0.041666668, %v564_v33  ;;  %v599_v39 = vadd.f32 %v598_v36, %v597_v32  ;;  %v601_v40 = vmul.f32 0.041666668, %v573_v35 }
 0x27b   :  { %v602_v41 = vmul.f32 0.041666668, %v590_v37  ;;  %v604_v42 = vmul.f32 %v600_v38, %v600_v38  ;;  %v603_v43 = vmul.f32 0.041666668, %v599_v39  ;;  %v605_v44 = vmul.f32 %v601_v40, %v601_v40 }
 0x27d   :  { %v606_v45 = vsub.f32 %v602_v41, %v604_v42  ;;  %v607_v46 = vsub.f32 %v603_v43, %v605_v44 }
 0x27f   :  { %v608_v47 = vmax.f32 %v606_v45, 0.0  ;;  %v609_v48 = vmax.f32 %v607_v46, 0.0 }
 0x281   :  { %v610_v49 = vadd.f32 1e-05, %v608_v47  ;;  %v611_v50 = vadd.f32 1e-05, %v609_v48 }
 0x283   :  { %903 = vrsqrt.f32 %v610_v49  ;;  %vm628_vm8 = vweird.f32 %v611_v50  ;;  %vm618_vm10 = vweird.f32 %v610_v49 }
 0x284   :  { %905 = vrsqrt.f32 %v611_v50 }
 0x289   :  { %v904_v18 = vpop.eup %903 }
 0x28a   :  { %v906_v55 = vpop.eup %905  ;;  %v613_v56 = vmul.f32 %v904_v18, %v610_v49  ;;  %vm619_vm7 = vweird.f32 %v904_v18 }
 0x28b   :  { %v623_v57 = vmul.f32 %v906_v55, %v611_v50  ;;  %vm629_vm6 = vweird.f32 %v906_v55  ;;  %vm620_vm12 = vmor %vm618_vm10, %vm619_vm7 }
 0x28c   :  { %v614_v58 = vmul.f32 %v904_v18, %v613_v56  ;;  %vm630_vm9 = vmor %vm628_vm8, %vm629_vm6 }
 0x28d   :  { %v624_v59 = vmul.f32 %v906_v55, %v623_v57 }
 0x28e   :  { %v615_v60 = vmul.f32 0.5, %v614_v58 }
 0x28f   :  { %v625_v62 = vmul.f32 0.5, %v624_v59 }
 0x290   :  { %v616_v63 = vsub.f32 1.5, %v615_v60 }
 0x291   :  { %v626_v0 = vsub.f32 1.5, %v625_v62 }
 0x292   :  { %v617_v1 = vmul.f32 %v904_v18, %v616_v63 }
 0x293   :  { %v627_v2 = vmul.f32 %v906_v55, %v626_v0 }
 0x294   :  { %v621_v6 = vsel %vm620_vm12, %v904_v18, %v617_v1 }
 0x295   :  { %v631_v3 = vsel %vm630_vm9, %v906_v55, %v627_v2 }
 0x296   :  { %v634_v5 = vrot.slane %v631_v3, 7 }
 0x298   :  { %v636_v7 = vsel %vm635_vm11, %v621_v6, %v634_v5 }
 0x299   :  { %v638_v8 = vmul.f32 %v636_v7, %v419_v4 }
 0x29b   :  { %v640_v14 = vperm.slane %v638_v8, 0  ;;  %v641_v10 = vperm.slane %v638_v8, 1 }
 0x29d   :  { %v645_v15 = vmul.f32 %v641_v10, %v601_v40  ;;  %v644_v16 = vmul.f32 %v640_v14, %v600_v38  ;;  %v652_v20 = vmul.f32 %v640_v14, %v1154_v51  ;;  %v653_v21 = vmul.f32 %v641_v10, %v1156_v52 }
 0x29e   :  { %v654_v24 = vmul.f32 %v640_v14, %v1158_v9  ;;  %v655_v25 = vmul.f32 %v641_v10, %v1160_v12  ;;  %v656_v26 = vmul.f32 %v640_v14, %v1162_v53  ;;  %v657_v27 = vmul.f32 %v641_v10, %v1164_v54 }
 0x29f   :  { %v648_v17 = vrot.slane %v645_v15, 7 }
 0x2a1   :  { %v649_v19 = vsel %vm635_vm11, %v644_v16, %v648_v17 }
 0x2a2   :  { %v651_v13 = vsub.f32 %v421_v11, %v649_v19 }
 0x2a4   :  { %v661_v22 = vperm.slane %v651_v13, 0  ;;  %v662_v23 = vperm.slane %v651_v13, 1 }
 0x2a6   :  { %v665_v28 = vadd.f32 %v661_v22, %v652_v20  ;;  %v666_v29 = vadd.f32 %v662_v23, %v653_v21  ;;  %v667_v30 = vadd.f32 %v661_v22, %v654_v24  ;;  %v668_v31 = vadd.f32 %v662_v23, %v655_v25 }
 0x2a7   :  { %v669_v32 = vadd.f32 %v661_v22, %v656_v26  ;;  %v670_v33 = vadd.f32 %v662_v23, %v657_v27 }
 0x2a8   :  { %v673_v34 = vmax.f32 %v665_v28, 0.0  ;;  %v674_v51 = vmax.f32 %v666_v29, 0.0  ;;  %v675_v35 = vmax.f32 %v667_v30, 0.0  ;;  %v676_v52 = vmax.f32 %v668_v31, 0.0 }
 0x2a9   :  { %v677_v36 = vmax.f32 %v669_v32, 0.0  ;;  %v678_v37 = vmax.f32 %v670_v33, 0.0 }
 0x2aa   :  { %v689_v9 = vpack.c.bf16 %v674_v51, %v673_v34  ;;  %v690_v12 = vpack.c.bf16 %v676_v52, %v675_v35 }
 0x2ab   :  { %v691_v53 = vpack.c.bf16 %v678_v37, %v677_v36 }
 0x2ac   :  { %693 = vst [vmem:[#allocation11] sm:$0xff] %v689_v9 }
 0x2ad   :  { %694 = vst [vmem:[#allocation11 + $0x8] sm:$0xff] %v690_v12 }
 0x2ae   :  { %695 = vst [vmem:[#allocation11 + $0x10] sm:$0xff] %v691_v53 }
 0x2af   :  { %709 = dma.vmem_to_hbm [thread:$0]  %s702_s4, 512, %s704_s21, [#allocation4], %s1063_s30, %s1063_s30, %s1064_s6  }
 0x2b0   :  { %1057 = dma.done.wait [#allocation4], 512  }
 0x2b1   :  { %1058 = vsyncadd [#allocation4], 4294966784 }
 0x2b2   :  { %714 = vsyncpa [#allocation3], 1 }
 0x2b3   :  { %715 = vsyncpa [#allocation6], 1 }
 0x2b4   :  { %716 = vsyncpa [#allocation9], 1 }
 0x2b5   :  { %717 = vsyncpa [#allocation4], 1 }

</bundles_post_ra>
